<compile_context>
chip_gen: v7x
topology: tpu7x:2x2x1
jax: 0.10.0
libtpu: 0.0.40
codegen_flags: <defaults>
</compile_context>

<pallas_src>
import jax
import jax.numpy as jnp
from jax.experimental import pallas as pl
from jax.experimental.pallas import tpu as pltpu


def mlp_kernel(x_ref, w1_ref, b1_ref, w2_ref, b2_ref, w3_ref, b3_ref, o_ref):
    # In-kernel cast: HBM streams f32 once, MXU sees bf16.
    x = x_ref[...].astype(jnp.bfloat16)                          # (TB, 784)

    # fc1 + sigmoid (MXU bf16, f32 accumulation / activation)
    h1 = jnp.dot(x, w1_ref[...], preferred_element_type=jnp.float32) + b1_ref[...]
    h1 = jax.nn.sigmoid(h1)                                      # (TB, 128) f32

    # fc2 + sigmoid
    h2 = jnp.dot(h1.astype(jnp.bfloat16), w2_ref[...],
                 preferred_element_type=jnp.float32) + b2_ref[...]
    h2 = jax.nn.sigmoid(h2)                                      # (TB, 64) f32

    # fc3
    logits = jnp.dot(h2.astype(jnp.bfloat16), w3_ref[...],
                     preferred_element_type=jnp.float32) + b3_ref[...]
    # (TB, 10) f32

    # log_softmax along dim=1 (numerically stable, f32)
    m = jnp.max(logits, axis=-1, keepdims=True)
    lse = jnp.log(jnp.sum(jnp.exp(logits - m), axis=-1, keepdims=True)) + m
    o_ref[...] = logits - lse


def _round_up(n, m):
    return ((n + m - 1) // m) * m


def _device_caps():
    """(max batch tile, scoped-VMEM limit bytes) per TPU generation."""
    try:
        kind = jax.devices()[0].device_kind.lower()
    except Exception:  # pragma: no cover - be conservative if query fails
        kind = ""
    if "v5" in kind:                       # 16 MiB default scoped, 128 MiB physical
        return 1024, 32 * 1024 * 1024
    if "v6" in kind:                       # 32 MiB default scoped, 128 MiB physical
        return 2048, 64 * 1024 * 1024
    # v7x and newer: 64 MiB physical per TensorCore -> stay well inside it.
    return 2048, 48 * 1024 * 1024


def mlp_forward(x, params):
    """x: (B, 1, 28, 28) or (B, 784), any float dtype. Returns (B, 10) f32 log-probs."""
    w1, b1, w2, b2, w3, b3 = params
    xf = x.reshape(-1, 28 * 28)            # free (contiguous) reshape, no dtype cast
    B = xf.shape[0]

    tb_cap, vmem_limit = _device_caps()

    # Batch tile: multiple of 8 (sublane), never larger than the batch itself,
    # capped per generation; once there is enough work, force >= 2 grid steps
    # so both v7x TensorCores are busy.
    tb = min(tb_cap, _round_up(B, 8))
    if B > 512:
        tb = min(tb, _round_up(pl.cdiv(B, 2), 256))
    num_tiles = pl.cdiv(B, tb)             # final block may be partial -> Pallas masks it

    # bf16 weights for the MXU; biases stay f32 (added after f32 accumulation).
    w1b, w2b, w3b = (w.astype(jnp.bfloat16) for w in (w1, w2, w3))
    b1f, b2f, b3f = (b.astype(jnp.float32) for b in (b1, b2, b3))

    # Weights/biases: full-shape blocks, constant index_map -> loaded once,
    # resident in VMEM across all batch tiles.
    resident = lambda shape: pl.BlockSpec(shape, lambda i: (0, 0))

    in_bytes_per_elem = jnp.dtype(xf.dtype).itemsize
    flops = 2 * B * (784 * 128 + 128 * 64 + 64 * 10)
    transcendentals = B * (128 + 64 + 10)               # sigmoids + exp in softmax
    bytes_accessed = (B * 784 * in_bytes_per_elem                 # input stream (read once)
                      + (784 * 128 + 128 * 64 + 64 * 10) * 2      # bf16 weights
                      + (128 + 64 + 10) * 4                       # f32 biases
                      + B * 10 * 4)                               # f32 output

    out = pl.pallas_call(
        mlp_kernel,
        out_shape=jax.ShapeDtypeStruct((B, 10), jnp.float32),
        grid=(num_tiles,),
        in_specs=[
            pl.BlockSpec((tb, 784), lambda i: (i, 0)),   # pipelined input tile (f32)
            resident((784, 128)), resident((1, 128)),
            resident((128, 64)),  resident((1, 64)),
            resident((64, 10)),   resident((1, 10)),
        ],
        out_specs=pl.BlockSpec((tb, 10), lambda i: (i, 0)),
        compiler_params=pltpu.CompilerParams(
            dimension_semantics=("parallel",),
            vmem_limit_bytes=vmem_limit),
        cost_estimate=pl.CostEstimate(
            flops=flops,
            transcendentals=transcendentals,
            bytes_accessed=bytes_accessed),
    )(xf, w1b, b1f, w2b, b2f, w3b, b3f)

    return out


def init_params(key):
    """Deterministic init mirroring nn.Linear default (uniform(-1/sqrt(in), 1/sqrt(in)))."""
    ks = jax.random.split(key, 6)

    def linear(kw, kb, fan_in, fan_out):
        bound = 1.0 / jnp.sqrt(jnp.float32(fan_in))
        # stored as (in, out); PyTorch stores (out, in) — semantics identical (x @ W).
        w = jax.random.uniform(kw, (fan_in, fan_out), jnp.float32, -bound, bound)
        b = jax.random.uniform(kb, (1, fan_out), jnp.float32, -bound, bound)
        return w, b

    w1, b1 = linear(ks[0], ks[1], 28 * 28, 128)
    w2, b2 = linear(ks[2], ks[3], 128, 64)
    w3, b3 = linear(ks[4], ks[5], 64, 10)
    return (w1, b1, w2, b2, w3, b3)


def reference_forward(x, params):
    """Pure-JAX f32 reference (matches the PyTorch module semantics)."""
    w1, b1, w2, b2, w3, b3 = params
    xf = x.reshape(-1, 28 * 28).astype(jnp.float32)
    h1 = jax.nn.sigmoid(xf @ w1 + b1)
    h2 = jax.nn.sigmoid(h1 @ w2 + b2)
    logits = h2 @ w3 + b3
    return jax.nn.log_softmax(logits, axis=1)


if __name__ == "__main__":
    key = jax.random.PRNGKey(0)
    k_x, k_p = jax.random.split(key)
    params = init_params(k_p)

    # Small batch (single, exactly-fitting tile).
    B = 8
    x = jax.random.normal(k_x, (B, 1, 28, 28), jnp.float32)
    out = jax.block_until_ready(mlp_forward(x, params))
    ref = reference_forward(x, params)
    assert out.shape == (B, 10)
    assert bool(jnp.all(jnp.isfinite(out)))
    # bf16 MXU operands => relaxed tolerance vs the f32 reference.
    assert jnp.allclose(out, ref, atol=5e-2, rtol=1e-2), "mismatch vs f32 reference (B=8)"

    # Non-multiple batch: exercises >=2 grid steps and the partial final block
    # (no wrapper-side padding pass any more).
    B2 = 600
    x2 = jax.random.normal(k_x, (B2, 1, 28, 28), jnp.float32)
    out2 = jax.block_until_ready(mlp_forward(x2, params))
    ref2 = reference_forward(x2, params)
    assert out2.shape == (B2, 10)
    assert bool(jnp.all(jnp.isfinite(out2)))
    assert jnp.allclose(out2, ref2, atol=5e-2, rtol=1e-2), "mismatch vs f32 reference (B=600)"

    print("KERNEL_OK")
</pallas_src>

<mosaic_0001>
module attributes {stable_mosaic.version = 11 : i64} {
  func.func @mlp_kernel(%arg0: i32, %arg1: memref<8x784xf32, #tpu.memory_space<vmem>>, %arg2: memref<784x128xbf16, #tpu.memory_space<vmem>>, %arg3: memref<1x128xf32, #tpu.memory_space<vmem>>, %arg4: memref<128x64xbf16, #tpu.memory_space<vmem>>, %arg5: memref<1x64xf32, #tpu.memory_space<vmem>>, %arg6: memref<64x10xbf16, #tpu.memory_space<vmem>>, %arg7: memref<1x10xf32, #tpu.memory_space<vmem>>, %arg8: memref<8x10xf32, #tpu.memory_space<vmem>>) attributes {dimension_semantics = [#tpu.dimension_semantics<parallel>], iteration_bounds = array<i64: 1>, scalar_prefetch = 0 : i64, scratch_operands = 0 : i64, tpu.core_type = #tpu.core_type<tc>, window_params = [{transform_indices = @transform_0, window_bounds = array<i64: 8, 784>}, {pipeline_mode = #tpu.pipeline_mode<synchronous>, transform_indices = @transform_1, window_bounds = array<i64: 784, 128>}, {pipeline_mode = #tpu.pipeline_mode<synchronous>, transform_indices = @transform_2, window_bounds = array<i64: 1, 128>}, {pipeline_mode = #tpu.pipeline_mode<synchronous>, transform_indices = @transform_3, window_bounds = array<i64: 128, 64>}, {pipeline_mode = #tpu.pipeline_mode<synchronous>, transform_indices = @transform_4, window_bounds = array<i64: 1, 64>}, {pipeline_mode = #tpu.pipeline_mode<synchronous>, transform_indices = @transform_5, window_bounds = array<i64: 64, 10>}, {pipeline_mode = #tpu.pipeline_mode<synchronous>, transform_indices = @transform_6, window_bounds = array<i64: 1, 10>}, {transform_indices = @transform_7, window_bounds = array<i64: 8, 10>}]} {
    %c0 = arith.constant 0 : index
    %c0_0 = arith.constant 0 : index
    %0 = vector.load %arg1[%c0, %c0_0] : memref<8x784xf32, #tpu.memory_space<vmem>>, vector<8x784xf32>
    %1 = arith.truncf %0 : vector<8x784xf32> to vector<8x784xbf16>
    %c0_1 = arith.constant 0 : index
    %c0_2 = arith.constant 0 : index
    %2 = vector.load %arg2[%c0_1, %c0_2] : memref<784x128xbf16, #tpu.memory_space<vmem>>, vector<784x128xbf16>
    %cst = arith.constant dense<0.000000e+00> : vector<8x128xf32>
    %3 = tpu.matmul %1, %2, %cst {dimension_numbers = #tpu.dot_dimension_numbers<[1], [0], [0], [1], [0, 0, 1, 1], [], []>} : vector<8x784xbf16>, vector<784x128xbf16>, vector<8x128xf32> -> vector<8x128xf32>
    %c0_3 = arith.constant 0 : index
    %c0_4 = arith.constant 0 : index
    %4 = vector.load %arg3[%c0_3, %c0_4] : memref<1x128xf32, #tpu.memory_space<vmem>>, vector<1x128xf32>
    %5 = vector.broadcast %4 : vector<1x128xf32> to vector<8x128xf32>
    %6 = arith.addf %3, %5 : vector<8x128xf32>
    %7 = arith.negf %6 : vector<8x128xf32>
    %8 = math.exp %7 : vector<8x128xf32>
    %cst_5 = arith.constant 1.000000e+00 : f32
    %9 = vector.broadcast %cst_5 : f32 to vector<8x128xf32>
    %10 = arith.addf %9, %8 : vector<8x128xf32>
    %11 = arith.divf %9, %10 : vector<8x128xf32>
    %12 = arith.truncf %11 : vector<8x128xf32> to vector<8x128xbf16>
    %c0_6 = arith.constant 0 : index
    %c0_7 = arith.constant 0 : index
    %13 = vector.load %arg4[%c0_6, %c0_7] : memref<128x64xbf16, #tpu.memory_space<vmem>>, vector<128x64xbf16>
    %cst_8 = arith.constant dense<0.000000e+00> : vector<8x64xf32>
    %14 = tpu.matmul %12, %13, %cst_8 {dimension_numbers = #tpu.dot_dimension_numbers<[1], [0], [0], [1], [0, 0, 1, 1], [], []>} : vector<8x128xbf16>, vector<128x64xbf16>, vector<8x64xf32> -> vector<8x64xf32>
    %c0_9 = arith.constant 0 : index
    %c0_10 = arith.constant 0 : index
    %15 = vector.load %arg5[%c0_9, %c0_10] : memref<1x64xf32, #tpu.memory_space<vmem>>, vector<1x64xf32>
    %16 = vector.broadcast %15 : vector<1x64xf32> to vector<8x64xf32>
    %17 = arith.addf %14, %16 : vector<8x64xf32>
    %18 = arith.negf %17 : vector<8x64xf32>
    %19 = math.exp %18 : vector<8x64xf32>
    %cst_11 = arith.constant 1.000000e+00 : f32
    %20 = vector.broadcast %cst_11 : f32 to vector<8x64xf32>
    %21 = arith.addf %20, %19 : vector<8x64xf32>
    %22 = arith.divf %20, %21 : vector<8x64xf32>
    %23 = arith.truncf %22 : vector<8x64xf32> to vector<8x64xbf16>
    %c0_12 = arith.constant 0 : index
    %c0_13 = arith.constant 0 : index
    %24 = vector.load %arg6[%c0_12, %c0_13] : memref<64x10xbf16, #tpu.memory_space<vmem>>, vector<64x10xbf16>
    %cst_14 = arith.constant dense<0.000000e+00> : vector<8x10xf32>
    %25 = tpu.matmul %23, %24, %cst_14 {dimension_numbers = #tpu.dot_dimension_numbers<[1], [0], [0], [1], [0, 0, 1, 1], [], []>} : vector<8x64xbf16>, vector<64x10xbf16>, vector<8x10xf32> -> vector<8x10xf32>
    %c0_15 = arith.constant 0 : index
    %c0_16 = arith.constant 0 : index
    %26 = vector.load %arg7[%c0_15, %c0_16] : memref<1x10xf32, #tpu.memory_space<vmem>>, vector<1x10xf32>
    %27 = vector.broadcast %26 : vector<1x10xf32> to vector<8x10xf32>
    %28 = arith.addf %25, %27 : vector<8x10xf32>
    %cst_17 = arith.constant dense<0xFF800000> : vector<8xf32>
    %29 = vector.multi_reduction <maximumf>, %28, %cst_17 [1] : vector<8x10xf32> to vector<8xf32>
    %30 = vector.shape_cast %29 : vector<8xf32> to vector<8x1xf32>
    %31 = vector.broadcast %30 : vector<8x1xf32> to vector<8x10xf32>
    %32 = arith.subf %28, %31 : vector<8x10xf32>
    %33 = math.exp %32 : vector<8x10xf32>
    %cst_18 = arith.constant dense<0.000000e+00> : vector<8xf32>
    %34 = vector.multi_reduction <add>, %33, %cst_18 [1] : vector<8x10xf32> to vector<8xf32>
    %35 = vector.shape_cast %34 : vector<8xf32> to vector<8x1xf32>
    %36 = math.log %35 : vector<8x1xf32>
    %37 = arith.addf %36, %30 : vector<8x1xf32>
    %38 = vector.broadcast %37 : vector<8x1xf32> to vector<8x10xf32>
    %39 = arith.subf %28, %38 : vector<8x10xf32>
    %c0_19 = arith.constant 0 : index
    %c0_20 = arith.constant 0 : index
    %40 = vector.load %arg8[%c0_19, %c0_20] : memref<8x10xf32, #tpu.memory_space<vmem>>, vector<8x10xf32>
    tpu.vector_store %arg8[%c0_19, %c0_20], %39 {strides = array<i32>} : memref<8x10xf32, #tpu.memory_space<vmem>>, vector<8x10xf32>,
    return
  }
  func.func @transform_0(%arg0: i32) -> (i32, i32) {
    %c0_i32 = arith.constant 0 : i32
    %c0_i32_0 = arith.constant 0 : i32
    return %arg0, %c0_i32 : i32, i32
  }
  func.func @transform_1(%arg0: i32) -> (i32, i32) {
    %c0_i32 = arith.constant 0 : i32
    %c0_i32_0 = arith.constant 0 : i32
    %c0_i32_1 = arith.constant 0 : i32
    return %c0_i32, %c0_i32_0 : i32, i32
  }
  func.func @transform_2(%arg0: i32) -> (i32, i32) {
    %c0_i32 = arith.constant 0 : i32
    %c0_i32_0 = arith.constant 0 : i32
    %c0_i32_1 = arith.constant 0 : i32
    return %c0_i32, %c0_i32_0 : i32, i32
  }
  func.func @transform_3(%arg0: i32) -> (i32, i32) {
    %c0_i32 = arith.constant 0 : i32
    %c0_i32_0 = arith.constant 0 : i32
    %c0_i32_1 = arith.constant 0 : i32
    return %c0_i32, %c0_i32_0 : i32, i32
  }
  func.func @transform_4(%arg0: i32) -> (i32, i32) {
    %c0_i32 = arith.constant 0 : i32
    %c0_i32_0 = arith.constant 0 : i32
    %c0_i32_1 = arith.constant 0 : i32
    return %c0_i32, %c0_i32_0 : i32, i32
  }
  func.func @transform_5(%arg0: i32) -> (i32, i32) {
    %c0_i32 = arith.constant 0 : i32
    %c0_i32_0 = arith.constant 0 : i32
    %c0_i32_1 = arith.constant 0 : i32
    return %c0_i32, %c0_i32_0 : i32, i32
  }
  func.func @transform_6(%arg0: i32) -> (i32, i32) {
    %c0_i32 = arith.constant 0 : i32
    %c0_i32_0 = arith.constant 0 : i32
    %c0_i32_1 = arith.constant 0 : i32
    return %c0_i32, %c0_i32_0 : i32, i32
  }
  func.func @transform_7(%arg0: i32) -> (i32, i32) {
    %c0_i32 = arith.constant 0 : i32
    %c0_i32_0 = arith.constant 0 : i32
    return %arg0, %c0_i32 : i32, i32
  }
}

</mosaic_0001>

<bundles_post_ra>
// kernel: tpu_custom_call.1
= control target key start
LH: loop header
LB: loop body
LE: loop exit
PB: predicated region body
PF: predicated region fallthrough
CT: control target
= control target key end

     0   :  { %12 = vsyncpa [#allocation3], 0  ;;  %s1330_s0 = inlined_call_operand.vmem [shape: f32[8,784], index: 0, kind: input, shape index: {}]   ;;  %s1331_s1 = inlined_call_operand.hbm [shape: bf16[784,128], index: 1, kind: input, shape index: {}]   ;;  %s1332_s2 = inlined_call_operand.vmem [shape: f32[1,128], index: 2, kind: input, shape index: {}]   ;;  %s1333_s3 = inlined_call_operand.vmem [shape: bf16[128,64], index: 3, kind: input, shape index: {}]   ;;  %s1334_s4 = inlined_call_operand.vmem [shape: f32[1,64], index: 4, kind: input, shape index: {}]   ;;  %s1335_s5 = inlined_call_operand.vmem [shape: bf16[64,10], index: 5, kind: input, shape index: {}]   ;;  %s1336_s6 = inlined_call_operand.vmem [shape: f32[1,10], index: 6, kind: input, shape index: {}]   ;;  %s1337_s7 = inlined_call_operand.hbm [shape: f32[8,10], index: 7, kind: output, shape index: {}]  }
   0x1   :  { %13 = vsyncpa [#allocation4], 0  ;;  %s1172_s24 = smov [#allocation2]   ;;  %s1124_s28 = scalar_lea.hbm %s1331_s1, 6272 }
   0x2   :  { %s21_s25 = sshll.u32 %s1172_s24, 4  ;;  %p1125_p0 = scmp.ne.s32.totalorder %s1331_s1, %s1124_s28  ;;  %s22_s25 = int_to_ptr.vmem [resolvable:$true] %s21_s25 }
   0x3   :  { %p1128_p1 = scmp.lt.u32.totalorder %s1124_s28, %s1331_s1 }
   0x5   :  { %p1130_p2 = pnand %p1128_p1, %p1125_p0 }
   0x7   :  { %1133 = shalt.err (!%p1130_p2)
}
   0x8   :  { %s1134_s10 = scalar_lea.vmem %s22_s25, 6272  ;;  %p1139_p4 = scmp.lt.s32.totalorder %s22_s25, %s22_s25 }
   0x9   :  { %p1135_p3 = scmp.ne.s32.totalorder %s22_s25, %s1134_s10  ;;  %p1140_p5 = scmp.lt.s32.totalorder %s1134_s10, %s1134_s10 }
   0xb   :  { %p1141_p6 = por %p1140_p5, %p1139_p4 }
   0xd   :  { %p1142_p7 = pnand %p1141_p6, %p1135_p3 }
   0xf   :  { %1145 = shalt.err (!%p1142_p7)
}
  0x10   :  { %s1173_s11 = smov 64   ;;  %s1174_s12 = smov 4  }
  0x11   :  { %27 = dma.hbm_to_vmem [thread:$0]  %s1331_s1, 6272, %s22_s25, [#allocation3], %s1173_s11, %s1173_s11, %s1174_s12  }
  0x12   :  { %1168 = dma.done.wait [#allocation3], 6272  }
  0x13   :  { %1169 = vsyncadd [#allocation3], 4294961024  ;;  %v1051_v0 = vld [vmem:[#allocation2 + $0x40] sm:$0xff]   ;;  %v1055_v4 = vld [vmem:[#allocation2 + $0x48] sm:$0xff]   ;;  %v1175_v44 = vmov 0.0   ;;  %vm1176_vm0 = vmmov 0  }
  0x14   :  { %v1052_v1 = vld [vmem:[#allocation2] sm:$0xff]   ;;  %925 = vmatprep.subr.bf16.mxu0 %v1051_v0  ;;  %v1056_v5 = vld [vmem:[#allocation2 + $0x8] sm:$0xff]   ;;  %v1059_v8 = vld [vmem:[#allocation2 + $0x50] sm:$0xff]   ;;  %vm455_vm1 = vcmask 130048   ;;  %vm783_vm2 = vcmask 523264   ;;  %vm827_vm3 = vcmask 80896  }
  0x15   :  { %v1053_v2 = vld [vmem:[#allocation2 + $0xc0] sm:$0xff]   ;;  %926 = vmatpush3.bf16.msra.mxu0 %v1052_v1  ;;  %v1057_v6 = vld [vmem:[#allocation2 + $0xc8] sm:$0xff]   ;;  %v1060_v9 = vld [vmem:[#allocation2 + $0x10] sm:$0xff]  }
  0x16   :  { %v1054_v3 = vld [vmem:[#allocation2 + $0x80] sm:$0xff]   ;;  %947 = vmatprep.subr.bf16.mxu1 %v1053_v2  ;;  %927 = vmatprep.subr.bf16.mxu0 %v1055_v4  ;;  %v1058_v7 = vld [vmem:[#allocation2 + $0x88] sm:$0xff]   ;;  %v1061_v10 = vld [vmem:[#allocation2 + $0xd0] sm:$0xff]  }
  0x17   :  { %948 = vmatpush3.bf16.msra.mxu1 %v1054_v3  ;;  %v1062_v11 = vld [vmem:[#allocation2 + $0x90] sm:$0xff]   ;;  %v1063_v12 = vld [vmem:[#allocation2 + $0x58] sm:$0xff]   ;;  %v1067_v16 = vld [vmem:[#allocation2 + $0x60] sm:$0xff]  }
  0x18   :  { %949 = vmatprep.subr.bf16.mxu1 %v1057_v6  ;;  %v1064_v13 = vld [vmem:[#allocation2 + $0x18] sm:$0xff]   ;;  %v1068_v17 = vld [vmem:[#allocation2 + $0x20] sm:$0xff]   ;;  %v1071_v20 = vld [vmem:[#allocation2 + $0x68] sm:$0xff]  }
  0x19   :  { %928 = vmatpush3.bf16.msra.mxu0 %v1056_v5  ;;  %v1065_v14 = vld [vmem:[#allocation2 + $0xd8] sm:$0xff]   ;;  %v1069_v18 = vld [vmem:[#allocation2 + $0xe0] sm:$0xff]   ;;  %v1072_v21 = vld [vmem:[#allocation2 + $0x28] sm:$0xff]  }
  0x1a   :  { %929 = vmatprep.subr.bf16.mxu0 %v1059_v8  ;;  %v1066_v15 = vld [vmem:[#allocation2 + $0x98] sm:$0xff]   ;;  %v1070_v19 = vld [vmem:[#allocation2 + $0xa0] sm:$0xff]   ;;  %v1073_v22 = vld [vmem:[#allocation2 + $0xe8] sm:$0xff]  }
  0x1b   :  { %950 = vmatpush3.bf16.msra.mxu1 %v1058_v7  ;;  %v1074_v23 = vld [vmem:[#allocation2 + $0xa8] sm:$0xff]   ;;  %v1075_v24 = vld [vmem:[#allocation2 + $0x70] sm:$0xff]   ;;  %v1079_v28 = vld [vmem:[#allocation2 + $0x78] sm:$0xff]  }
  0x1c   :  { %951 = vmatprep.subr.bf16.mxu1 %v1061_v10  ;;  %v1076_v25 = vld [vmem:[#allocation2 + $0x30] sm:$0xff]   ;;  %v1080_v29 = vld [vmem:[#allocation2 + $0x38] sm:$0xff]   ;;  %v43_v31 = vld [vmem:[%s1330_s0 + $0x8] sm:$0xff] }
  0x1d   :  { %930 = vmatpush3.bf16.msra.mxu0 %v1060_v9  ;;  %v1077_v26 = vld [vmem:[#allocation2 + $0xf0] sm:$0xff]   ;;  %v1081_v30 = vld [vmem:[#allocation2 + $0xf8] sm:$0xff]   ;;  %v50_v32 = vpack.c.bf16 %v43_v31, %v43_v31  ;;  %v42_v34 = vld [vmem:[%s1330_s0] sm:$0xff] }
  0x1e   :  { %931 = vmatprep.subr.bf16.mxu0 %v1063_v12  ;;  %v1078_v27 = vld [vmem:[#allocation2 + $0xb0] sm:$0xff]   ;;  %v1082_v33 = vld [vmem:[#allocation2 + $0xb8] sm:$0xff]   ;;  %v49_v35 = vpack.c.bf16 %v42_v34, %v42_v34  ;;  %v1083_v36 = vld [vmem:[#allocation2 + $0x140] sm:$0xff]  }
  0x1f   :  { %952 = vmatpush3.bf16.msra.mxu1 %v1062_v11  ;;  %v45_v37 = vld [vmem:[%s1330_s0 + $0x18] sm:$0xff]  ;;  %491 = vmatprep.mubr.bf16.mxu0 %v50_v32  ;;  %v1084_v39 = vld [vmem:[#allocation2 + $0x100] sm:$0xff]   ;;  %v44_v40 = vld [vmem:[%s1330_s0 + $0x10] sm:$0xff] }
  0x20   :  { %953 = vmatprep.subr.bf16.mxu1 %v1065_v14  ;;  %v52_v38 = vpack.c.bf16 %v45_v37, %v45_v37  ;;  %v51_v41 = vpack.c.bf16 %v44_v40, %v44_v40  ;;  %v1085_v42 = vld [vmem:[#allocation2 + $0x148] sm:$0xff]   ;;  %v1087_v45 = vld [vmem:[#allocation2 + $0x150] sm:$0xff]   ;;  %v1089_v47 = vld [vmem:[#allocation2 + $0x158] sm:$0xff]  }
  0x21   :  { %932 = vmatpush3.bf16.msra.mxu0 %v1064_v13  ;;  %v1086_v43 = vld [vmem:[#allocation2 + $0x108] sm:$0xff]   ;;  %v1088_v46 = vld [vmem:[#allocation2 + $0x110] sm:$0xff]   ;;  %v1090_v48 = vld [vmem:[#allocation2 + $0x118] sm:$0xff]  }
  0x22   :  { %933 = vmatprep.subr.bf16.mxu0 %v1067_v16  ;;  %531 = vmatprep.mubr.bf16.mxu1 %v52_v38  ;;  %v1091_v49 = vld [vmem:[#allocation2 + $0x160] sm:$0xff]   ;;  %v1093_v51 = vld [vmem:[#allocation2 + $0x168] sm:$0xff]   ;;  %v1095_v55 = vld [vmem:[#allocation2 + $0x170] sm:$0xff]  }
  0x23   :  { %954 = vmatpush3.bf16.msra.mxu1 %v1066_v15  ;;  %v1092_v50 = vld [vmem:[#allocation2 + $0x120] sm:$0xff]   ;;  %v1094_v52 = vld [vmem:[#allocation2 + $0x128] sm:$0xff]   ;;  %v48_v57 = vld [vmem:[%s1330_s0 + $0x30] sm:$0xff] }
  0x24   :  { %955 = vmatprep.subr.bf16.mxu1 %v1069_v18  ;;  %v1099_v53 = vld [vmem:[#allocation2 + $0x180] sm:$0xff]   ;;  %v47_v54 = vld [vmem:[%s1330_s0 + $0x28] sm:$0xff]  ;;  %v55_v58 = vpack.c.bf16 %v48_v57, %v48_v57  ;;  %v1096_v59 = vld [vmem:[#allocation2 + $0x130] sm:$0xff]  }
  0x25   :  { %934 = vmatpush3.bf16.msra.mxu0 %v1068_v17  ;;  %v54_v56 = vpack.c.bf16 %v47_v54, %v47_v54  ;;  %v1097_v60 = vld [vmem:[#allocation2 + $0x178] sm:$0xff]   ;;  %v46_v62 = vld [vmem:[%s1330_s0 + $0x20] sm:$0xff]  ;;  %v1101_v1 = vld [vmem:[%s1333_s3 + $0x8] sm:$0xff]  }
  0x26   :  { %935 = vmatprep.subr.bf16.mxu0 %v1071_v20  ;;  %v1098_v61 = vld [vmem:[#allocation2 + $0x138] sm:$0xff]   ;;  %v53_v63 = vpack.c.bf16 %v46_v62, %v46_v62  ;;  %v1100_v0 = vld [vmem:[%s1333_s3] sm:$0xff]   ;;  %v1102_v2 = vld [vmem:[%s1333_s3 + $0x10] sm:$0xff]  }
  0x27   :  { %956 = vmatpush3.bf16.msra.mxu1 %v1070_v19  ;;  %v1103_v3 = vld [vmem:[%s1333_s3 + $0x18] sm:$0xff]   ;;  %v1104_v4 = vld [vmem:[%s1333_s3 + $0x20] sm:$0xff]   ;;  %v1105_v5 = vld [vmem:[%s1333_s3 + $0x28] sm:$0xff]  }
  0x28   :  { %957 = vmatprep.subr.bf16.mxu1 %v1073_v22  ;;  %v1106_v6 = vld [vmem:[%s1333_s3 + $0x30] sm:$0xff]   ;;  %v1107_v7 = vld [vmem:[%s1333_s3 + $0x38] sm:$0xff]   ;;  %v857_v9 = vld [vmem:[%s1332_s2] ss:$0 sm:$0xff] }
  0x29   :  { %936 = vmatpush3.bf16.msra.mxu0 %v1072_v21  ;;  %v1108_v37 = vld [vmem:[%s1335_s5] sm:$0xff]   ;;  %v1109_v38 = vld [vmem:[%s1335_s5 + $0x8] sm:$0xff]   ;;  %v1111_v40 = vld [vmem:[%s1335_s5 + $0x18] sm:$0xff]  }
  0x2a   :  { %937 = vmatprep.subr.bf16.mxu0 %v1075_v24 }
  0x2b   :  { %958 = vmatpush3.bf16.msra.mxu1 %v1074_v23 }
  0x2c   :  { %959 = vmatprep.subr.bf16.mxu1 %v1077_v26 }
  0x2d   :  { %938 = vmatpush3.bf16.msra.mxu0 %v1076_v25 }
  0x2e   :  { %939 = vmatprep.subr.bf16.mxu0 %v1079_v28 }
  0x2f   :  { %960 = vmatpush3.bf16.msra.mxu1 %v1078_v27 }
  0x30   :  { %961 = vmatprep.subr.bf16.mxu1 %v1081_v30 }
  0x31   :  { %940 = vmatpush3.bf16.msra.mxu0 %v1080_v29 }
  0x32   :  { %969 = vmatprep.subr.bf16.mxu0 %v1083_v36 }
  0x33   :  { %962 = vmatpush3.bf16.msra.mxu1 %v1082_v33 }
  0x34   :  { %492 = vmatmul.mubr.bf16.vlgmr.msra.gmra.mrb[0].mxu0 %v49_v35  ;;  %1007 = vmatprep.subr.bf16.mxu1 %v1175_v44 }
  0x35   :  { %970 = vmatpush3.bf16.msra.mxu0 %v1084_v39  ;;  %571 = vmatprep.mubr.bf16.mxu0 %v54_v56  ;;  %v1110_v39 = vld [vmem:[%s1335_s5 + $0x10] sm:$0xff]  }
  0x36   :  { %532 = vmatmul.mubr.bf16.vlgmr.msra.gmra.mrb[0].mxu1 %v51_v41  ;;  %971 = vmatprep.subr.bf16.mxu0 %v1085_v42  ;;  %v909_v41 = vld [vmem:[%s1334_s4] ss:$0 sm:$0xff]  ;;  %s1177_s4 = smov [#allocation5]  }
  0x37   :  { %1009 = vmatprep.mubr.msk.bf16.mxu1 %vm1176_vm0, %v1175_v44  ;;  %1008 = vmatpush3.bf16.msra.mxu1 %v1099_v53 }
  0x38   :  { %1013 = vmatprep.subr.bf16.mxu1 %v1175_v44 }
  0x39   :  { %972 = vmatpush3.bf16.msra.mxu0 %v1086_v43 }
  0x3a   :  { %973 = vmatprep.subr.bf16.mxu0 %v1087_v45 }
  0x3d   :  { %974 = vmatpush3.bf16.msra.mxu0 %v1088_v46 }
  0x3e   :  { %975 = vmatprep.subr.bf16.mxu0 %v1089_v47  ;;  %1010 = vmatmul.mubr.msk.bf16.vlgmr.msra.gmra.mrb[4].mxu1 %vm455_vm1, %v55_v58 }
  0x3f   :  { %1029 = vmatprep.mubr.msk.bf16.mxu1 %vm1176_vm0, %v1175_v44  ;;  %1014 = vmatpush3.bf16.msra.mxu1 %v1100_v0 }
  0x40   :  { %1015 = vmatprep.subr.bf16.mxu1 %v1175_v44 }
  0x41   :  { %976 = vmatpush3.bf16.msra.mxu0 %v1090_v48 }
  0x42   :  { %977 = vmatprep.subr.bf16.mxu0 %v1091_v49 }
  0x43   :  { %1016 = vmatpush3.bf16.msra.mxu1 %v1101_v1 }
  0x44   :  { %1017 = vmatprep.subr.bf16.mxu1 %v1175_v44 }
  0x45   :  { %978 = vmatpush3.bf16.msra.mxu0 %v1092_v50 }
  0x46   :  { %979 = vmatprep.subr.bf16.mxu0 %v1093_v51 }
  0x47   :  { %1018 = vmatpush3.bf16.msra.mxu1 %v1102_v2 }
  0x48   :  { %1019 = vmatprep.subr.bf16.mxu1 %v1175_v44 }
  0x49   :  { %980 = vmatpush3.bf16.msra.mxu0 %v1094_v52  ;;  %v919_v52 = vld [vmem:[%s1336_s6] ss:$0 sm:$0xff]  ;;  %s848_s6 = sshll.u32 %s1177_s4, 4  ;;  %s849_s6 = int_to_ptr.vmem [resolvable:$true] %s848_s6 }
  0x4a   :  { %981 = vmatprep.subr.bf16.mxu0 %v1095_v55  ;;  %s1146_s30 = scalar_lea.vmem %s849_s6, 128  ;;  %p1151_p9 = scmp.lt.s32.totalorder %s849_s6, %s849_s6 }
  0x4b   :  { %1020 = vmatpush3.bf16.msra.mxu1 %v1103_v3  ;;  %p1147_p8 = scmp.ne.s32.totalorder %s849_s6, %s1146_s30  ;;  %p1152_p10 = scmp.lt.s32.totalorder %s1146_s30, %s1146_s30 }
  0x4c   :  { %1021 = vmatprep.subr.bf16.mxu1 %v1175_v44 }
  0x4d   :  { %982 = vmatpush3.bf16.msra.mxu0 %v1096_v59  ;;  %p1153_p11 = por %p1152_p10, %p1151_p9 }
  0x4e   :  { %983 = vmatprep.subr.bf16.mxu0 %v1097_v60 }
  0x4f   :  { %1022 = vmatpush3.bf16.msra.mxu1 %v1104_v4  ;;  %p1154_p12 = pnand %p1153_p11, %p1147_p8 }
  0x50   :  { %1023 = vmatprep.subr.bf16.mxu1 %v1175_v44 }
  0x51   :  { %984 = vmatpush3.bf16.msra.mxu0 %v1098_v61 }
  0x52   :  { %1033 = vmatprep.subr.bf16.mxu0 %v1175_v44 }
  0x53   :  { %1024 = vmatpush3.bf16.msra.mxu1 %v1105_v5 }
  0x54   :  { %572 = vmatmul.mubr.bf16.vlgmr.msra.gmra.mrb[4].mxu0 %v53_v63  ;;  %1025 = vmatprep.subr.bf16.mxu1 %v1175_v44 }
  0x55   :  { %1041 = vmatprep.mubr.msk.bf16.mxu0 %vm1176_vm0, %v1175_v44  ;;  %1034 = vmatpush3.bf16.msra.mxu0 %v1108_v37 }
  0x56   :  { %1035 = vmatprep.subr.bf16.mxu0 %v1175_v44 }
  0x57   :  { %1026 = vmatpush3.bf16.msra.mxu1 %v1106_v6 }
  0x58   :  { %1027 = vmatprep.subr.bf16.mxu1 %v1175_v44 }
  0x59   :  { %1036 = vmatpush3.bf16.msra.mxu0 %v1109_v38 }
  0x5a   :  { %1037 = vmatprep.subr.bf16.mxu0 %v1175_v44 }
  0x5b   :  { %1028 = vmatpush3.bf16.msra.mxu1 %v1107_v7 }
  0x5d   :  { %1038 = vmatpush3.bf16.msra.mxu0 %v1110_v39 }
  0x5e   :  { %1039 = vmatprep.subr.bf16.mxu0 %v1175_v44 }
  0x61   :  { %1040 = vmatpush3.bf16.msra.mxu0 %v1111_v40 }
 0x107   :  { %v941_v8 = vpop.f32.mrb[0].mxu0 }
 0x108   :  { %v942_v10 = vpop.f32.mrb[1].mxu0 }
 0x109   :  { %v943_v11 = vadd.f32 %v942_v10, %v941_v8  ;;  %v944_v12 = vpop.f32.mrb[2].mxu0  ;;  %v963_v13 = vpop.f32.mrb[0].mxu1 }
 0x10a   :  { %v945_v14 = vpop.f32.mrb[3].mxu0  ;;  %v964_v16 = vpop.f32.mrb[1].mxu1 }
 0x10b   :  { %v494_v15 = vadd.f32 %v943_v11, %v857_v9  ;;  %v965_v17 = vadd.f32 %v964_v16, %v963_v13  ;;  %v966_v18 = vpop.f32.mrb[2].mxu1 }
 0x10c   :  { %v967_v19 = vpop.f32.mrb[3].mxu1 }
 0x10d   :  { %v534_v20 = vadd.f32 %v965_v17, %v494_v15 }
 0x111   :  { %v613_v21 = vpop.f32.mrb[4].mxu1 }
 0x112   :  { %v1011_v22 = vpop.f32.mrb[5].mxu1 }
 0x113   :  { %v616_v23 = vpop.f32.mrb[6].mxu1 }
 0x114   :  { %v1012_v24 = vpop.f32.mrb[7].mxu1 }
 0x127   :  { %v985_v25 = vpop.f32.mrb[4].mxu0 }
 0x128   :  { %v986_v26 = vpop.f32.mrb[5].mxu0 }
 0x129   :  { %v987_v27 = vadd.f32 %v986_v26, %v985_v25  ;;  %v988_v28 = vpop.f32.mrb[6].mxu0 }
 0x12a   :  { %v989_v29 = vpop.f32.mrb[7].mxu0 }
 0x12b   :  { %v574_v30 = vadd.f32 %v987_v27, %v534_v20 }
 0x12d   :  { %v614_v31 = vadd.f32 %v613_v21, %v574_v30 }
 0x12f   :  { %v908_v32 = vmul.f32 -1.442695, %v614_v31 }
 0x131   :  { %1112 = vpow2.f32 %v908_v32 }
 0x13b   :  { %v1113_v33 = vpop.eup %1112 }
 0x13c   :  { %v622_v34 = vadd.f32 1.0, %v1113_v33 }
 0x13e   :  { %1114 = vrcp.f32 %v622_v34 }
 0x148   :  { %v1115_v35 = vpop.eup %1114 }
 0x149   :  { %v625_v36 = vpack.c.bf16 %v1115_v35, %v1115_v35 }
 0x14b   :  { %1030 = vmatmul.mubr.bf16.vlgmr.msra.gmra.mrb[8].mxu1 %v625_v36 }
 0x21e   :  { %v731_v42 = vpop.f32.mrb[8].mxu1 }
 0x21f   :  { %v732_v43 = vadd.f32 %v909_v41, %v731_v42  ;;  %v1031_v45 = vpop.f32.mrb[9].mxu1 }
 0x220   :  { %v734_v46 = vpop.f32.mrb[10].mxu1 }
 0x221   :  { %v918_v47 = vmul.f32 -1.442695, %v732_v43  ;;  %v1032_v48 = vpop.f32.mrb[11].mxu1 }
 0x223   :  { %1116 = vpow2.f32 %v918_v47 }
 0x22d   :  { %v1117_v49 = vpop.eup %1116 }
 0x22e   :  { %v740_v50 = vadd.f32 1.0, %v1117_v49 }
 0x230   :  { %1118 = vrcp.f32 %v740_v50 }
 0x23a   :  { %v1119_v44 = vpop.eup %1118 }
 0x23b   :  { %v743_v51 = vpack.c.bf16 %v1119_v44, %v1119_v44 }
 0x23d   :  { %1042 = vmatmul.mubr.msk.bf16.vlgmr.msra.gmra.mrb[8].mxu0 %vm783_vm2, %v743_v51 }
 0x310   :  { %v821_v53 = vpop.f32.mrb[8].mxu0 }
 0x311   :  { %v822_v54 = vadd.f32 %v919_v52, %v821_v53  ;;  %v1043_v55 = vpop.f32.mrb[9].mxu0 }
 0x312   :  { %v824_v56 = vpop.f32.mrb[10].mxu0 }
 0x313   :  { %v1044_v57 = vpop.f32.mrb[11].mxu0  ;;  %v828_v58 = vsel %vm827_vm3, %v822_v54, -inf }
 0x314   :  { %829 = vmax.xlane.f32.xlu0 %v828_v58 }
 0x3a1   :  { %v830_v59 = vpop.xlane.xlu0 %829 }
 0x3a2   :  { %v831_v60 = vsub.f32 %v822_v54, %v830_v59 }
 0x3a4   :  { %v832_v61 = vmul.f32 1.442695, %v831_v60 }
 0x3a6   :  { %1120 = vpow2.f32 %v832_v61 }
 0x3b0   :  { %v1121_v62 = vpop.eup %1120 }
 0x3b1   :  { %v834_v63 = vsel %vm827_vm3, %v1121_v62, 0.0 }
 0x3b2   :  { %835 = vadd.xlane.f32.xlu0 %v834_v63 }
 0x43f   :  { %v836_v0 = vpop.xlane.xlu0 %835 }
 0x440   :  { %1122 = vlog2.f32 %v836_v0 }
 0x44a   :  { %v1123_v1 = vpop.eup %1122 }
 0x44b   :  { %v838_v2 = vmul.f32 0.6931472, %v1123_v1 }
 0x44d   :  { %v839_v3 = vadd.f32 %v838_v2, %v830_v59 }
 0x44f   :  { %v840_v4 = vsub.f32 %v822_v54, %v839_v3 }
 0x451   :  { %841 = vst.msk [vmem:[#allocation5] sm:$0xff] %vm827_vm3, %v840_v4 }
 0x452   :  { %1157 = shalt.err (!%p1154_p12)
}
 0x453   :  { %s1158_s9 = scalar_lea.hbm %s1337_s7, 128 }
 0x454   :  { %p1159_p13 = scmp.ne.s32.totalorder %s1337_s7, %s1158_s9  ;;  %p1162_p0 = scmp.lt.u32.totalorder %s1158_s9, %s1337_s7 }
 0x456   :  { %p1164_p1 = pnand %p1162_p0, %p1159_p13 }
 0x458   :  { %1167 = shalt.err (!%p1164_p1)
}
 0x459   :  { %851 = dma.vmem_to_hbm [thread:$0]  %s849_s6, 128, %s1337_s7, [#allocation4]  }
 0x45a   :  { %1170 = dma.done.wait [#allocation4], 128  }
 0x45b   :  { %1171 = vsyncadd [#allocation4], 4294967168 }
 0x45c   :  { %855 = vsyncpa [#allocation3], 1 }
 0x45d   :  { %856 = vsyncpa [#allocation4], 1 }

</bundles_post_ra>
